<compile_context>
chip_gen: v7x
topology: tpu7x:2x2x1
jax: 0.10.0
libtpu: 0.0.40
codegen_flags: <defaults>
</compile_context>

<pallas_src>
import jax
import jax.numpy as jnp
from jax.experimental import pallas as pl
from jax.experimental.pallas import tpu as pltpu

LANE = 128
SUB = 8
TILE_R_MAX = 2048  # rows of 128 lanes per grid step; keep a multiple of 32.


def _round_up(x, m):
    return (x + m - 1) // m * m


def _sublane_multiple(*dtypes):
    """Sublane alignment so tiles stay native for the narrowest streamed dtype."""
    mult = SUB
    for dt in dtypes:
        itemsize = jnp.dtype(dt).itemsize
        mult = max(mult, SUB * max(1, 4 // itemsize))  # f32->8, bf16->16, i8->32
    return mult


def _as_lane_slab(a, rows, lane_pad):
    """Flatten to (rows, LANE) in the array's NATIVE dtype (no f32 copy)."""
    flat = jnp.ravel(a)
    if lane_pad:
        flat = jnp.pad(flat, (0, lane_pad))  # only when numel % 128 != 0
    return flat.reshape(rows, LANE)


def mse_loss(prediction, target, mask=None):
    """Pallas implementation of MSE.forward (PyTorch semantics).

    - mask is None:  mean((prediction - target)**2)          [nn.MSELoss default]
    - mask given:    sum((p - t)**2 * mask) / (sum(mask) + 1e-6)
    """
    n = prediction.size
    lane_pad = (-n) % LANE
    rows = (n + lane_pad) // LANE

    if mask is not None and mask.dtype == jnp.bool_:
        mask = mask.astype(jnp.int8)  # 1-byte HBM stream; cast to f32 in-kernel

    dtypes = [prediction.dtype, target.dtype]
    if mask is not None:
        dtypes.append(mask.dtype)
    mult = _sublane_multiple(*dtypes)
    tile_r = min(TILE_R_MAX, _round_up(rows, mult))
    grid_n = pl.cdiv(rows, tile_r)
    needs_row_mask = (rows % tile_r) != 0

    p2 = _as_lane_slab(prediction, rows, lane_pad)
    t2 = _as_lane_slab(target, rows, lane_pad)

    in_spec = pl.BlockSpec((tile_r, LANE), lambda i: (i, 0))
    out_spec = pl.BlockSpec((1, SUB, LANE), lambda i: (i, 0, 0))
    cparams = pltpu.CompilerParams(dimension_semantics=("parallel",))

    def _mask_rows(pid, x):
        # Zero rows past the valid range (the ragged last tile reads garbage).
        row = jax.lax.broadcasted_iota(jnp.int32, x.shape, 0)
        return jnp.where(pid * tile_r + row < rows, x, 0.0)

    def _partial(x):
        # (tile_r, LANE) -> (SUB, LANE): pure VPU adds over the leading axis.
        # The single cross-lane reduce happens once, in the wrapper.
        return jnp.sum(x.reshape(tile_r // SUB, SUB, LANE), axis=0)

    if mask is None:
        def _sumsq_kernel(p_ref, t_ref, o_ref):
            pid = pl.program_id(0)
            d = p_ref[...].astype(jnp.float32) - t_ref[...].astype(jnp.float32)
            if needs_row_mask:
                d = _mask_rows(pid, d)
            o_ref[...] = _partial(d * d)[None]

        bytes_accessed = int(
            p2.size * p2.dtype.itemsize
            + t2.size * t2.dtype.itemsize
            + grid_n * SUB * LANE * 4
        )
        partials = pl.pallas_call(
            _sumsq_kernel,
            out_shape=jax.ShapeDtypeStruct((grid_n, SUB, LANE), jnp.float32),
            grid=(grid_n,),
            in_specs=[in_spec, in_spec],
            out_specs=out_spec,
            compiler_params=cparams,
            cost_estimate=pl.CostEstimate(
                flops=3 * n, transcendentals=0, bytes_accessed=bytes_accessed
            ),
        )(p2, t2)
        return jnp.sum(partials) / jnp.float32(n)

    m2 = _as_lane_slab(mask, rows, lane_pad)

    def _masked_kernel(p_ref, t_ref, m_ref, num_ref, den_ref):
        pid = pl.program_id(0)
        p = p_ref[...].astype(jnp.float32)
        t = t_ref[...].astype(jnp.float32)
        m = m_ref[...].astype(jnp.float32)
        d = p - t
        if needs_row_mask:
            d = _mask_rows(pid, d)  # also kills NaN/Inf garbage before the mul
            m = _mask_rows(pid, m)
        num_ref[...] = _partial(d * d * m)[None]
        den_ref[...] = _partial(m)[None]

    bytes_accessed = int(
        p2.size * p2.dtype.itemsize
        + t2.size * t2.dtype.itemsize
        + m2.size * m2.dtype.itemsize
        + 2 * grid_n * SUB * LANE * 4
    )
    num_p, den_p = pl.pallas_call(
        _masked_kernel,
        out_shape=(
            jax.ShapeDtypeStruct((grid_n, SUB, LANE), jnp.float32),
            jax.ShapeDtypeStruct((grid_n, SUB, LANE), jnp.float32),
        ),
        grid=(grid_n,),
        in_specs=[in_spec, in_spec, in_spec],
        out_specs=(out_spec, out_spec),
        compiler_params=cparams,
        cost_estimate=pl.CostEstimate(
            flops=6 * n, transcendentals=0, bytes_accessed=bytes_accessed
        ),
    )(p2, t2, m2)
    return jnp.sum(num_p) / (jnp.sum(den_p) + jnp.float32(1e-6))


if __name__ == "__main__":
    key = jax.random.PRNGKey(0)
    k1, k2, k3, k4, k5, k6 = jax.random.split(key, 6)

    # Small NCHW-style inputs (MSE is shape-agnostic; reduction over all elems).
    shape = (2, 4, 16, 16)
    prediction = jax.random.normal(k1, shape, dtype=jnp.float32)
    target = jax.random.normal(k2, shape, dtype=jnp.float32)
    mask = (jax.random.uniform(k3, shape) > 0.5).astype(jnp.float32)

    out_u = jax.block_until_ready(mse_loss(prediction, target))
    ref_u = jnp.mean((prediction - target) ** 2)
    assert jnp.allclose(out_u, ref_u, rtol=1e-5, atol=1e-5)

    out_m = jax.block_until_ready(mse_loss(prediction, target, mask))
    ref_m = jnp.sum((prediction - target) ** 2 * mask) / (jnp.sum(mask) + 1e-6)
    assert jnp.allclose(out_m, ref_m, rtol=1e-5, atol=1e-5)

    # Larger ragged bf16 inputs + bool mask: exercises native-dtype streaming,
    # the multi-step big-tile grid, the ragged last tile and the in-kernel
    # row mask (2500 rows of 128, tile_r = 2048 -> 2 grid steps).
    shape2 = (4, 8, 100, 100)
    p_b = jax.random.normal(k4, shape2, dtype=jnp.bfloat16)
    t_b = jax.random.normal(k5, shape2, dtype=jnp.bfloat16)
    m_b = jax.random.uniform(k6, shape2) > 0.5

    p_f = p_b.astype(jnp.float32)
    t_f = t_b.astype(jnp.float32)
    m_f = m_b.astype(jnp.float32)

    out_u2 = jax.block_until_ready(mse_loss(p_b, t_b))
    ref_u2 = jnp.mean((p_f - t_f) ** 2)
    assert jnp.allclose(out_u2, ref_u2, rtol=1e-4, atol=1e-4)

    out_m2 = jax.block_until_ready(mse_loss(p_b, t_b, m_b))
    ref_m2 = jnp.sum((p_f - t_f) ** 2 * m_f) / (jnp.sum(m_f) + 1e-6)
    assert jnp.allclose(out_m2, ref_m2, rtol=1e-4, atol=1e-4)

    print("KERNEL_OK")
</pallas_src>

<mosaic_0001>
module attributes {stable_mosaic.version = 11 : i64} {
  func.func @_sumsq_kernel(%arg0: i32, %arg1: memref<16x128xf32, #tpu.memory_space<vmem>>, %arg2: memref<16x128xf32, #tpu.memory_space<vmem>>, %arg3: memref<1x8x128xf32, #tpu.memory_space<vmem>>) attributes {dimension_semantics = [#tpu.dimension_semantics<parallel>], iteration_bounds = array<i64: 1>, scalar_prefetch = 0 : i64, scratch_operands = 0 : i64, tpu.core_type = #tpu.core_type<tc>, window_params = [{transform_indices = @transform_0, window_bounds = array<i64: 16, 128>}, {transform_indices = @transform_1, window_bounds = array<i64: 16, 128>}, {transform_indices = @transform_2, window_bounds = array<i64: 1, 8, 128>}]} {
    %c0 = arith.constant 0 : index
    %c0_0 = arith.constant 0 : index
    %0 = vector.load %arg1[%c0, %c0_0] : memref<16x128xf32, #tpu.memory_space<vmem>>, vector<16x128xf32>
    %c0_1 = arith.constant 0 : index
    %c0_2 = arith.constant 0 : index
    %1 = vector.load %arg2[%c0_1, %c0_2] : memref<16x128xf32, #tpu.memory_space<vmem>>, vector<16x128xf32>
    %2 = arith.subf %0, %1 : vector<16x128xf32>
    %3 = arith.mulf %2, %2 : vector<16x128xf32>
    %4 = vector.shape_cast %3 : vector<16x128xf32> to vector<2x8x128xf32>
    %cst = arith.constant dense<0.000000e+00> : vector<8x128xf32>
    %5 = vector.multi_reduction <add>, %4, %cst [0] : vector<2x8x128xf32> to vector<8x128xf32>
    %6 = vector.shape_cast %5 : vector<8x128xf32> to vector<1x8x128xf32>
    %c0_3 = arith.constant 0 : index
    %c0_4 = arith.constant 0 : index
    %c0_5 = arith.constant 0 : index
    %7 = vector.load %arg3[%c0_3, %c0_4, %c0_5] : memref<1x8x128xf32, #tpu.memory_space<vmem>>, vector<1x8x128xf32>
    tpu.vector_store %arg3[%c0_3, %c0_4, %c0_5], %6 {strides = array<i32>} : memref<1x8x128xf32, #tpu.memory_space<vmem>>, vector<1x8x128xf32>,
    return
  }
  func.func @transform_0(%arg0: i32) -> (i32, i32) {
    %c0_i32 = arith.constant 0 : i32
    %c0_i32_0 = arith.constant 0 : i32
    return %arg0, %c0_i32 : i32, i32
  }
  func.func @transform_1(%arg0: i32) -> (i32, i32) {
    %c0_i32 = arith.constant 0 : i32
    %c0_i32_0 = arith.constant 0 : i32
    return %arg0, %c0_i32 : i32, i32
  }
  func.func @transform_2(%arg0: i32) -> (i32, i32, i32) {
    %c0_i32 = arith.constant 0 : i32
    %c0_i32_0 = arith.constant 0 : i32
    %c0_i32_1 = arith.constant 0 : i32
    return %arg0, %c0_i32, %c0_i32_0 : i32, i32, i32
  }
}

</mosaic_0001>

<bundles_post_ra>
// kernel: tpu_custom_call.1
= control target key start
LH: loop header
LB: loop body
LE: loop exit
PB: predicated region body
PF: predicated region fallthrough
CT: control target
= control target key end

     0   :  { %7 = vsyncpa [#allocation3], 0  ;;  %s199_s0 = inlined_call_operand.hbm [shape: f32[16,128], index: 0, kind: input, shape index: {}]   ;;  %s200_s1 = inlined_call_operand.hbm [shape: f32[16,128], index: 1, kind: input, shape index: {}]   ;;  %s201_s2 = inlined_call_operand.hbm [shape: f32[1,8,128], index: 2, kind: output, shape index: {}]  }
   0x1   :  { %8 = vsyncpa [#allocation6], 0 }
   0x2   :  { %9 = vsyncpa [#allocation4], 0  ;;  %s143_s9 = smov [#allocation2]   ;;  %s71_s13 = scalar_lea.hbm %s199_s0, 256 }
   0x3   :  { %s15_s10 = sshll.u32 %s143_s9, 4  ;;  %p72_p0 = scmp.ne.s32.totalorder %s199_s0, %s71_s13  ;;  %s16_s10 = int_to_ptr.vmem [resolvable:$true] %s15_s10 }
   0x4   :  { %p75_p1 = scmp.lt.u32.totalorder %s71_s13, %s199_s0 }
   0x6   :  { %p77_p2 = pnand %p75_p1, %p72_p0 }
   0x8   :  { %80 = shalt.err (!%p77_p2)
}
   0x9   :  { %s81_s18 = scalar_lea.vmem %s16_s10, 256  ;;  %p86_p4 = scmp.lt.s32.totalorder %s16_s10, %s16_s10 }
   0xa   :  { %p82_p3 = scmp.ne.s32.totalorder %s16_s10, %s81_s18  ;;  %p87_p5 = scmp.lt.s32.totalorder %s81_s18, %s81_s18 }
   0xc   :  { %p88_p6 = por %p87_p5, %p86_p4 }
   0xe   :  { %p89_p7 = pnand %p88_p6, %p82_p3 }
  0x10   :  { %92 = shalt.err (!%p89_p7)
}
  0x11   :  { %s144_s19 = smov 128   ;;  %s145_s20 = smov 8  }
  0x12   :  { %21 = dma.hbm_to_vmem [thread:$0]  %s199_s0, 256, %s16_s10, [#allocation3], %s144_s19, %s144_s19, %s145_s20  }
  0x13   :  { %s146_s23 = smov [#allocation5]   ;;  %s93_s27 = scalar_lea.hbm %s200_s1, 256 }
  0x14   :  { %s27_s24 = sshll.u32 %s146_s23, 4  ;;  %p94_p8 = scmp.ne.s32.totalorder %s200_s1, %s93_s27  ;;  %s28_s24 = int_to_ptr.vmem [resolvable:$true] %s27_s24 }
  0x15   :  { %p97_p9 = scmp.lt.u32.totalorder %s93_s27, %s200_s1 }
  0x17   :  { %p99_p10 = pnand %p97_p9, %p94_p8 }
  0x19   :  { %102 = shalt.err (!%p99_p10)
}
  0x1a   :  { %s103_s4 = scalar_lea.vmem %s28_s24, 256  ;;  %p108_p12 = scmp.lt.s32.totalorder %s28_s24, %s28_s24 }
  0x1b   :  { %p104_p11 = scmp.ne.s32.totalorder %s28_s24, %s103_s4  ;;  %p109_p13 = scmp.lt.s32.totalorder %s103_s4, %s103_s4 }
  0x1d   :  { %p110_p0 = por %p109_p13, %p108_p12 }
  0x1f   :  { %p111_p1 = pnand %p110_p0, %p104_p11 }
  0x21   :  { %114 = shalt.err (!%p111_p1)
}
  0x22   :  { %33 = dma.hbm_to_vmem [thread:$0]  %s200_s1, 256, %s28_s24, [#allocation6], %s144_s19, %s144_s19, %s145_s20  }
  0x23   :  { %137 = dma.done.wait [#allocation3], 256  }
  0x24   :  { %138 = vsyncadd [#allocation3], 4294967040 }
  0x25   :  { %139 = dma.done.wait [#allocation6], 256  }
  0x26   :  { %140 = vsyncadd [#allocation6], 4294967040  ;;  %v40_v0 = vld [vmem:[#allocation2] sm:$0xff]  ;;  %v41_v1 = vld [vmem:[#allocation2 + $0x8] sm:$0xff]  ;;  %s147_s6 = smov [#allocation7]  }
  0x27   :  { %v42_v2 = vld [vmem:[#allocation5] sm:$0xff]  ;;  %v43_v3 = vld [vmem:[#allocation5 + $0x8] sm:$0xff]  ;;  %s56_s7 = sshll.u32 %s147_s6, 4  ;;  %s57_s7 = int_to_ptr.vmem [resolvable:$true] %s56_s7 }
  0x28   :  { %v44_v4 = vsub.f32 %v40_v0, %v42_v2  ;;  %v45_v5 = vsub.f32 %v41_v1, %v43_v3  ;;  %s115_s8 = scalar_lea.vmem %s57_s7, 128  ;;  %p120_p3 = scmp.lt.s32.totalorder %s57_s7, %s57_s7 }
  0x29   :  { %p116_p2 = scmp.ne.s32.totalorder %s57_s7, %s115_s8  ;;  %p121_p4 = scmp.lt.s32.totalorder %s115_s8, %s115_s8 }
  0x2a   :  { %v46_v6 = vmul.f32 %v44_v4, %v44_v4  ;;  %v47_v7 = vmul.f32 %v45_v5, %v45_v5 }
  0x2b   :  { %p122_p5 = por %p121_p4, %p120_p3 }
  0x2c   :  { %v48_v8 = vadd.f32 %v47_v7, %v46_v6 }
  0x2d   :  { %p123_p6 = pnand %p122_p5, %p116_p2 }
  0x2e   :  { %49 = vst [vmem:[#allocation7] sm:$0xff] %v48_v8 }
  0x2f   :  { %126 = shalt.err (!%p123_p6)
}
  0x30   :  { %s127_s10 = scalar_lea.hbm %s201_s2, 128 }
  0x31   :  { %p128_p7 = scmp.ne.s32.totalorder %s201_s2, %s127_s10  ;;  %p131_p8 = scmp.lt.u32.totalorder %s127_s10, %s201_s2 }
  0x33   :  { %p133_p9 = pnand %p131_p8, %p128_p7 }
  0x35   :  { %136 = shalt.err (!%p133_p9)
}
  0x36   :  { %59 = dma.vmem_to_hbm [thread:$0]  %s57_s7, 128, %s201_s2, [#allocation4]  }
  0x37   :  { %141 = dma.done.wait [#allocation4], 128  }
  0x38   :  { %142 = vsyncadd [#allocation4], 4294967168 }
  0x39   :  { %63 = vsyncpa [#allocation3], 1 }
  0x3a   :  { %64 = vsyncpa [#allocation6], 1 }
  0x3b   :  { %65 = vsyncpa [#allocation4], 1 }

</bundles_post_ra>
